<compile_context>
chip_gen: v7x
topology: tpu7x:2x2x1
jax: 0.10.0
libtpu: 0.0.40
codegen_flags: <defaults>
</compile_context>

<pallas_src>
import jax
import jax.numpy as jnp
from jax.experimental import pallas as pl
from jax.experimental.pallas import tpu as pltpu


# ---------------------------------------------------------------------------
# VMEM budgeting: 6 streams (4 in + 2 out) x 2 pipeline buffers x tile_bytes
# must fit comfortably inside the scoped-VMEM budget on every generation
# (v7x has only 64 MiB physical / 32 MiB scoped VMEM -> keep tiles <= 24 MiB
# total so double-buffering never degrades).
# ---------------------------------------------------------------------------
_VMEM_LIMIT_BYTES = 32 * 1024 * 1024   # explicit scoped-VMEM request
_VMEM_TILE_BUDGET = 24 * 1024 * 1024   # 12 x block_bytes <= this


def _pick_c_tile(C, HW_pad, el_bytes):
    """Largest channel tile (divisor of C, multiple of 8 or == C) within budget."""
    per_row = 6 * 2 * HW_pad * el_bytes          # 6 streams, double-buffered
    max_rows = max(1, _VMEM_TILE_BUDGET // per_row)
    if C <= max_rows:
        return C                                 # whole channel slab per step
    best = None
    for d in range(1, C + 1):
        if C % d == 0 and d <= max_rows and (d % 8 == 0 or d == C):
            best = d
    return best if best is not None else C


# ---------------------------------------------------------------------------
# Kernel: fused cross-stream feature mixing.
#   hand_sub = x_obj_second + z_y * s1[b]     with s1 = msk * gamma1
#   obj_sub  = x_hand_second + z_x * s2[b]    with s2 = msk * gamma2
# s1/s2 live in SMEM (scalar prefetch); the scalar product is hoisted out of
# the kernel entirely, so the VPU work per vreg is 1 vmul + 1 vadd per stream.
# ---------------------------------------------------------------------------
def fused_mix_kernel(s1_ref, s2_ref,
                     xo2_ref, zy_ref, xh2_ref, zx_ref,
                     hand_sub_ref, obj_sub_ref):
    b = pl.program_id(0)
    s1 = s1_ref[b]
    s2 = s2_ref[b]
    hand_sub_ref[...] = xo2_ref[...] + zy_ref[...] * s1
    obj_sub_ref[...] = xh2_ref[...] + zx_ref[...] * s2


def fused_cross_mix(x_obj_second, z_y, x_hand_second, z_x, msk, gamma1, gamma2):
    """hand_sub, obj_sub from NCHW feature maps + per-batch interaction mask."""
    B, C, H, W = x_obj_second.shape
    HW = H * W
    # Lane-dense guardrail: pad the flattened spatial axis up to a multiple of
    # 128 so output stores are unmasked vst (roi_res=16/32 -> HW=256/1024, no-op).
    HW_pad = ((HW + 127) // 128) * 128
    dtype = x_obj_second.dtype
    el_bytes = jnp.dtype(dtype).itemsize

    def flat(a):
        a = a.reshape(B, C, HW)
        if HW_pad != HW:
            a = jnp.pad(a, ((0, 0), (0, 0), (0, HW_pad - HW)))
        return a

    # Hoist per-batch scalar products out of the kernel (and out of the grid loop).
    mskf = msk.astype(jnp.float32)
    s1 = mskf * jnp.reshape(gamma1.astype(jnp.float32), ())
    s2 = mskf * jnp.reshape(gamma2.astype(jnp.float32), ())

    c_tile = _pick_c_tile(C, HW_pad, el_bytes)
    grid = (B, C // c_tile)   # both axes independent -> fully "parallel" (megacore)

    spec = pl.BlockSpec((1, c_tile, HW_pad), lambda b, c, *_: (b, c, 0))

    hand_sub, obj_sub = pl.pallas_call(
        fused_mix_kernel,
        out_shape=(jax.ShapeDtypeStruct((B, C, HW_pad), dtype),
                   jax.ShapeDtypeStruct((B, C, HW_pad), dtype)),
        grid_spec=pltpu.PrefetchScalarGridSpec(
            num_scalar_prefetch=2,               # s1 (B,), s2 (B,) -> SMEM
            grid=grid,
            in_specs=[spec, spec, spec, spec],
            out_specs=(spec, spec)),
        compiler_params=pltpu.CompilerParams(
            dimension_semantics=("parallel", "parallel"),
            vmem_limit_bytes=_VMEM_LIMIT_BYTES),
    )(s1, s2, flat(x_obj_second), flat(z_y), flat(x_hand_second), flat(z_x))

    if HW_pad != HW:
        hand_sub = hand_sub[:, :, :HW]
        obj_sub = obj_sub[:, :, :HW]
    return hand_sub.reshape(B, C, H, W), obj_sub.reshape(B, C, H, W)


# ---------------------------------------------------------------------------
# bbox intersection + interaction mask: plain JAX (tiny, XLA fuses it; a Pallas
# kernel here costs >100x its compute in launch overhead).
# ---------------------------------------------------------------------------
def bbox_intersection(bbox_hand, bbox_obj):
    tl = jnp.maximum(bbox_hand[:, :2], bbox_obj[:, :2])
    br = jnp.minimum(bbox_hand[:, 2:], bbox_obj[:, 2:])
    bbox_inter = jnp.concatenate([tl, br], axis=1)
    msk_inter = ((br - tl) > 0).sum(axis=1) == 2
    return bbox_inter, msk_inter


@jax.jit
def hofec_interaction(bbox_hand, bbox_obj,
                      x_obj_second, z_y, x_hand_second, z_x,
                      gamma1, gamma2):
    bbox_inter, msk = bbox_intersection(bbox_hand, bbox_obj)
    hand_sub, obj_sub = fused_cross_mix(
        x_obj_second, z_y, x_hand_second, z_x, msk, gamma1, gamma2)
    return bbox_inter, msk, hand_sub, obj_sub


# ---------------------------------------------------------------------------
if __name__ == "__main__":
    key = jax.random.PRNGKey(0)
    B, C, R = 2, 32, 16   # batch, channels (256 in reference, small here), roi_res
    k1, k2, k3, k4 = jax.random.split(key, 4)

    # Boxes in (x1, y1, x2, y2) pixel coordinates.
    bbox_hand = jnp.array([[10., 12., 80., 90.],
                           [5., 40., 60., 70.]], dtype=jnp.float32)
    bbox_obj = jnp.array([[30., 20., 120., 100.],
                          [70., 45., 110., 95.]], dtype=jnp.float32)

    # Synthetic post-roi_align / post-SpatialGate feature maps (NCHW).
    x_obj_second = jax.random.normal(k1, (B, C, R, R), jnp.float32)
    z_y = jax.random.normal(k2, (B, C, R, R), jnp.float32)
    x_hand_second = jax.random.normal(k3, (B, C, R, R), jnp.float32)
    z_x = jax.random.normal(k4, (B, C, R, R), jnp.float32)

    # Deterministic parameters exactly as in HOFEC.__init__: gamma1 = gamma2 = 0.25
    gamma1 = jnp.array([0.25], dtype=jnp.float32)
    gamma2 = jnp.array([0.25], dtype=jnp.float32)

    bbox_inter, msk, hand_sub, obj_sub = hofec_interaction(
        bbox_hand, bbox_obj, x_obj_second, z_y, x_hand_second, z_x,
        gamma1, gamma2)
    jax.block_until_ready((bbox_inter, msk, hand_sub, obj_sub))

    # Pure-JAX reference check.
    tl = jnp.maximum(bbox_hand[:, :2], bbox_obj[:, :2])
    br = jnp.minimum(bbox_hand[:, 2:], bbox_obj[:, 2:])
    ref_inter = jnp.concatenate([tl, br], axis=1)
    ref_msk = ((br - tl) > 0).sum(axis=1) == 2
    mb = ref_msk.astype(jnp.float32)[:, None, None, None]
    ref_hand_sub = x_obj_second + mb * z_y * 0.25
    ref_obj_sub = x_hand_second + mb * z_x * 0.25

    assert jnp.allclose(bbox_inter, ref_inter)
    assert jnp.array_equal(msk, ref_msk)
    assert jnp.allclose(hand_sub, ref_hand_sub, atol=1e-5)
    assert jnp.allclose(obj_sub, ref_obj_sub, atol=1e-5)

    print("KERNEL_OK")
</pallas_src>

<mosaic_0001>
module attributes {stable_mosaic.version = 11 : i64} {
  func.func @fused_mix_kernel(%arg0: i32, %arg1: i32, %arg2: memref<2xf32, #tpu.memory_space<smem>>, %arg3: memref<2xf32, #tpu.memory_space<smem>>, %arg4: memref<1x32x256xf32, #tpu.memory_space<vmem>>, %arg5: memref<1x32x256xf32, #tpu.memory_space<vmem>>, %arg6: memref<1x32x256xf32, #tpu.memory_space<vmem>>, %arg7: memref<1x32x256xf32, #tpu.memory_space<vmem>>, %arg8: memref<1x32x256xf32, #tpu.memory_space<vmem>>, %arg9: memref<1x32x256xf32, #tpu.memory_space<vmem>>) attributes {dimension_semantics = [#tpu.dimension_semantics<parallel>, #tpu.dimension_semantics<parallel>], iteration_bounds = array<i64: 2, 1>, scalar_prefetch = 2 : i64, scratch_operands = 0 : i64, tpu.core_type = #tpu.core_type<tc>, window_params = [{transform_indices = @transform_0, window_bounds = array<i64: 1, 32, 256>}, {transform_indices = @transform_1, window_bounds = array<i64: 1, 32, 256>}, {transform_indices = @transform_2, window_bounds = array<i64: 1, 32, 256>}, {transform_indices = @transform_3, window_bounds = array<i64: 1, 32, 256>}, {transform_indices = @transform_4, window_bounds = array<i64: 1, 32, 256>}, {transform_indices = @transform_5, window_bounds = array<i64: 1, 32, 256>}]} {
    %0 = arith.index_cast %arg0 : i32 to index
    %1 = memref.load %arg2[%0] : memref<2xf32, #tpu.memory_space<smem>>
    %2 = arith.index_cast %arg0 : i32 to index
    %3 = memref.load %arg3[%2] : memref<2xf32, #tpu.memory_space<smem>>
    %c0 = arith.constant 0 : index
    %c0_0 = arith.constant 0 : index
    %c0_1 = arith.constant 0 : index
    %4 = vector.load %arg4[%c0, %c0_0, %c0_1] : memref<1x32x256xf32, #tpu.memory_space<vmem>>, vector<1x32x256xf32>
    %c0_2 = arith.constant 0 : index
    %c0_3 = arith.constant 0 : index
    %c0_4 = arith.constant 0 : index
    %5 = vector.load %arg5[%c0_2, %c0_3, %c0_4] : memref<1x32x256xf32, #tpu.memory_space<vmem>>, vector<1x32x256xf32>
    %6 = vector.broadcast %1 : f32 to vector<1x32x256xf32>
    %7 = arith.mulf %5, %6 : vector<1x32x256xf32>
    %8 = arith.addf %4, %7 : vector<1x32x256xf32>
    %c0_5 = arith.constant 0 : index
    %c0_6 = arith.constant 0 : index
    %c0_7 = arith.constant 0 : index
    %9 = vector.load %arg8[%c0_5, %c0_6, %c0_7] : memref<1x32x256xf32, #tpu.memory_space<vmem>>, vector<1x32x256xf32>
    tpu.vector_store %arg8[%c0_5, %c0_6, %c0_7], %8 {strides = array<i32>} : memref<1x32x256xf32, #tpu.memory_space<vmem>>, vector<1x32x256xf32>,
    %c0_8 = arith.constant 0 : index
    %c0_9 = arith.constant 0 : index
    %c0_10 = arith.constant 0 : index
    %10 = vector.load %arg6[%c0_8, %c0_9, %c0_10] : memref<1x32x256xf32, #tpu.memory_space<vmem>>, vector<1x32x256xf32>
    %c0_11 = arith.constant 0 : index
    %c0_12 = arith.constant 0 : index
    %c0_13 = arith.constant 0 : index
    %11 = vector.load %arg7[%c0_11, %c0_12, %c0_13] : memref<1x32x256xf32, #tpu.memory_space<vmem>>, vector<1x32x256xf32>
    %12 = vector.broadcast %3 : f32 to vector<1x32x256xf32>
    %13 = arith.mulf %11, %12 : vector<1x32x256xf32>
    %14 = arith.addf %10, %13 : vector<1x32x256xf32>
    %c0_14 = arith.constant 0 : index
    %c0_15 = arith.constant 0 : index
    %c0_16 = arith.constant 0 : index
    %15 = vector.load %arg9[%c0_14, %c0_15, %c0_16] : memref<1x32x256xf32, #tpu.memory_space<vmem>>, vector<1x32x256xf32>
    tpu.vector_store %arg9[%c0_14, %c0_15, %c0_16], %14 {strides = array<i32>} : memref<1x32x256xf32, #tpu.memory_space<vmem>>, vector<1x32x256xf32>,
    return
  }
  func.func @transform_0(%arg0: i32, %arg1: i32, %arg2: memref<2xf32, #tpu.memory_space<smem>>, %arg3: memref<2xf32, #tpu.memory_space<smem>>) -> (i32, i32, i32) {
    %c0_i32 = arith.constant 0 : i32
    %c0_i32_0 = arith.constant 0 : i32
    return %arg0, %arg1, %c0_i32 : i32, i32, i32
  }
  func.func @transform_1(%arg0: i32, %arg1: i32, %arg2: memref<2xf32, #tpu.memory_space<smem>>, %arg3: memref<2xf32, #tpu.memory_space<smem>>) -> (i32, i32, i32) {
    %c0_i32 = arith.constant 0 : i32
    %c0_i32_0 = arith.constant 0 : i32
    return %arg0, %arg1, %c0_i32 : i32, i32, i32
  }
  func.func @transform_2(%arg0: i32, %arg1: i32, %arg2: memref<2xf32, #tpu.memory_space<smem>>, %arg3: memref<2xf32, #tpu.memory_space<smem>>) -> (i32, i32, i32) {
    %c0_i32 = arith.constant 0 : i32
    %c0_i32_0 = arith.constant 0 : i32
    return %arg0, %arg1, %c0_i32 : i32, i32, i32
  }
  func.func @transform_3(%arg0: i32, %arg1: i32, %arg2: memref<2xf32, #tpu.memory_space<smem>>, %arg3: memref<2xf32, #tpu.memory_space<smem>>) -> (i32, i32, i32) {
    %c0_i32 = arith.constant 0 : i32
    %c0_i32_0 = arith.constant 0 : i32
    return %arg0, %arg1, %c0_i32 : i32, i32, i32
  }
  func.func @transform_4(%arg0: i32, %arg1: i32, %arg2: memref<2xf32, #tpu.memory_space<smem>>, %arg3: memref<2xf32, #tpu.memory_space<smem>>) -> (i32, i32, i32) {
    %c0_i32 = arith.constant 0 : i32
    %c0_i32_0 = arith.constant 0 : i32
    return %arg0, %arg1, %c0_i32 : i32, i32, i32
  }
  func.func @transform_5(%arg0: i32, %arg1: i32, %arg2: memref<2xf32, #tpu.memory_space<smem>>, %arg3: memref<2xf32, #tpu.memory_space<smem>>) -> (i32, i32, i32) {
    %c0_i32 = arith.constant 0 : i32
    %c0_i32_0 = arith.constant 0 : i32
    return %arg0, %arg1, %c0_i32 : i32, i32, i32
  }
}

</mosaic_0001>

<bundles_post_ra>
// kernel: hofec_interaction.1
= control target key start
LH: loop header
LB: loop body
LE: loop exit
PB: predicated region body
PF: predicated region fallthrough
CT: control target
= control target key end

     0   :  { %s985_s0 = inlined_call_operand.vmem [shape: f32[2], index: 0, kind: input, shape index: {}]   ;;  %s986_s2 = inlined_call_operand.vmem [shape: f32[2,32,256], index: 2, kind: input, shape index: {}]   ;;  %s987_s3 = inlined_call_operand.vmem [shape: f32[2,32,256], index: 3, kind: input, shape index: {}]   ;;  %s988_s4 = inlined_call_operand.vmem [shape: f32[2,32,256], index: 4, kind: input, shape index: {}]   ;;  %s989_s5 = inlined_call_operand.vmem [shape: f32[2,32,256], index: 5, kind: input, shape index: {}]   ;;  %s990_s6 = inlined_call_operand.vmem [shape: f32[2,32,256], index: 6, kind: output, shape index: {0}]   ;;  %s991_s7 = inlined_call_operand.vmem [shape: f32[2,32,256], index: 7, kind: output, shape index: {1}]   ;;  %s992_s1 = inlined_call_operand.vmem [shape: f32[2], index: 1, kind: input, shape index: {}]  }
   0x1   :  { %s13_s26 = sshll.u32 %s985_s0, 4  ;;  %s17_s29 = sshll.u32 %s992_s1, 4  ;;  %s14_s26 = int_to_ptr.vmem [resolvable:$true] %s13_s26  ;;  %s18_s29 = int_to_ptr.vmem [resolvable:$true] %s17_s29 }
   0x2   :  { %s774_s30 = scalar_lea.vmem %s14_s26, 16  ;;  %p779_p1 = scmp.lt.s32.totalorder %s14_s26, %s14_s26 }
   0x3   :  { %p775_p0 = scmp.ne.s32.totalorder %s14_s26, %s774_s30  ;;  %p780_p2 = scmp.lt.s32.totalorder %s774_s30, %s774_s30 }
   0x5   :  { %p781_p3 = por %p780_p2, %p779_p1 }
   0x7   :  { %p782_p4 = pnand %p781_p3, %p775_p0 }
   0x9   :  { %785 = shalt.err (!%p782_p4)  }
   0xa   :  { %s824_s8 = smov [#allocation3]   ;;  %s786_s9 = scalar_lea.vmem %s18_s29, 16 }
   0xb   :  { %16 = dma.vmem_to_smem %s14_s26, 16, %s824_s8, [#allocation2] }
   0xc   :  { %p787_p5 = scmp.ne.s32.totalorder %s18_s29, %s786_s9  ;;  %p791_p6 = scmp.lt.s32.totalorder %s18_s29, %s18_s29 }
   0xd   :  { %p792_p7 = scmp.lt.s32.totalorder %s786_s9, %s786_s9 }
   0xf   :  { %p793_p8 = por %p792_p7, %p791_p6 }
  0x11   :  { %p794_p9 = pnand %p793_p8, %p787_p5 }
  0x13   :  { %797 = shalt.err (!%p794_p9)  }
  0x14   :  { %s825_s0 = smov [#allocation4]  }
  0x15   :  { %20 = dma.vmem_to_smem %s18_s29, 16, %s825_s0, [#allocation2] }
  0x16   :  { %810 = dma.done.wait [#allocation2], 32 }
  0x17   :  { %811 = vsyncadd [#allocation2], 4294967264 }
  0x18   :  { %22 = sfence }
  0x19   :  { %s872_s1 = smov 0   ;;  %s874_s10 = smov 0  }
  0x1a   :  { %s876_s11 = smov 0  }
  0x1b LB: > { %s40_s12 = sadd.s32 1, %s818_s10  ;;  %p727_p10 = scmp.ge.s32.totalorder %s822_s11, 1  ;;  %s822_s11 = sphi %s876_s11, %s28_s11   ;;  %s818_s10 = sphi %s874_s10, %s994_s10   ;;  %s814_s1 = sphi %s872_s1, %s993_s1  }
  0x1c   : > { %p42_p11 = scmp.ge.s32.totalorder %s40_s12, 2  ;;  %p280_p12 = scmp.lt.s32.totalorder %s822_s11, 3 }
  0x1e   : > { %s996_s12 = smov (%p42_p11, %s40_s12), 0  ;;  %p281_p13 = pnand %p727_p10, %p280_p12 }
  0x1f   : > { %p359_p0 = scmp.lt.s32.totalorder (!%p281_p13), %s814_s1, 1  ;;  %s424_s13 = sld [smem:[#allocation3 + %s814_s1]] (!%p281_p13) }
  0x20   : > { %284 = sbr.rel (%p281_p13) target bundleno = 59 (0x3b), region = 36  ;;  %s425_s14 = sld [smem:[#allocation4 + %s814_s1]] (!%p281_p13) }
  0x25   : > { %v442_v2 = vstv (!%p281_p13), %s424_s13 }
  0x26   : > { %v483_v18 = vstv (!%p281_p13), %s425_s14 }
  0x27   : > { %s998_s1 = smov (!%p359_p0, %s814_s1), 1 }
  0x28   : > { %s890_s15 = sshll.u32 %s998_s1, 6 }
  0x29   : > { %s896_s18 = scalar_lea.vmem %s986_s2, %s890_s15  ;;  %s902_s21 = scalar_lea.vmem %s987_s3, %s890_s15 }
  0x2a   : > { %v426_v0 = vld [vmem:[%s896_s18] sm:$0xff]  ;;  %v427_v3 = vld [vmem:[%s896_s18 + $0x8] sm:$0xff]  ;;  %s911_s24 = scalar_lea.vmem %s990_s6, %s890_s15  ;;  %v428_v6 = vld [vmem:[%s896_s18 + $0x10] sm:$0xff]  ;;  %s923_s27 = scalar_lea.vmem %s988_s4, %s890_s15 }
  0x2b   : > { %v434_v1 = vld [vmem:[%s902_s21] sm:$0xff]  ;;  %v435_v5 = vld [vmem:[%s902_s21 + $0x8] sm:$0xff]  ;;  %v436_v7 = vld [vmem:[%s902_s21 + $0x10] sm:$0xff]  ;;  %s929_s30 = scalar_lea.vmem %s989_s5, %s890_s15  ;;  %s951_s0 = scalar_lea.vmem %s991_s7, %s890_s15 }
  0x2c   : > { %v443_v4 = vmul.f32 %v442_v2, %v434_v1  ;;  %v444_v8 = vmul.f32 %v442_v2, %v435_v5  ;;  %v445_v9 = vmul.f32 %v442_v2, %v436_v7  ;;  %v429_v10 = vld [vmem:[%s896_s18 + $0x18] sm:$0xff]  ;;  %v430_v12 = vld [vmem:[%s896_s18 + $0x20] sm:$0xff]  ;;  %v431_v16 = vld [vmem:[%s896_s18 + $0x28] sm:$0xff] }
  0x2d   : > { %v437_v11 = vld [vmem:[%s902_s21 + $0x18] sm:$0xff]  ;;  %v438_v15 = vld [vmem:[%s902_s21 + $0x20] sm:$0xff]  ;;  %v439_v17 = vld [vmem:[%s902_s21 + $0x28] sm:$0xff] }
  0x2e   : > { %v451_v13 = vadd.f32 %v443_v4, %v426_v0  ;;  %v446_v14 = vmul.f32 %v442_v2, %v437_v11  ;;  %v452_v19 = vadd.f32 %v444_v8, %v427_v3  ;;  %v453_v20 = vadd.f32 %v445_v9, %v428_v6  ;;  %v432_v23 = vld [vmem:[%s896_s18 + $0x30] sm:$0xff]  ;;  %v433_v25 = vld [vmem:[%s896_s18 + $0x38] sm:$0xff]  ;;  %v467_v29 = vld [vmem:[%s923_s27] sm:$0xff] }
  0x2f   : > { %v447_v21 = vmul.f32 %v442_v2, %v438_v15  ;;  %v448_v22 = vmul.f32 %v442_v2, %v439_v17  ;;  %v440_v24 = vld [vmem:[%s902_s21 + $0x30] sm:$0xff]  ;;  %v441_v28 = vld [vmem:[%s902_s21 + $0x38] sm:$0xff]  ;;  %v475_v30 = vld [vmem:[%s929_s30] sm:$0xff] }
  0x30   : > { %459 = vst [vmem:[%s911_s24] sm:$0xff] %v451_v13  ;;  %v454_v26 = vadd.f32 %v446_v14, %v429_v10  ;;  %v449_v27 = vmul.f32 %v442_v2, %v440_v24  ;;  %460 = vst [vmem:[%s911_s24 + $0x8] sm:$0xff] %v452_v19  ;;  %v450_v33 = vmul.f32 %v442_v2, %v441_v28  ;;  %v468_v35 = vld [vmem:[%s923_s27 + $0x8] sm:$0xff]  ;;  %v469_v37 = vld [vmem:[%s923_s27 + $0x10] sm:$0xff] }
  0x31   : > { %461 = vst [vmem:[%s911_s24 + $0x10] sm:$0xff] %v453_v20  ;;  %v455_v31 = vadd.f32 %v447_v21, %v430_v12  ;;  %v456_v32 = vadd.f32 %v448_v22, %v431_v16  ;;  %v484_v34 = vmul.f32 %v483_v18, %v475_v30  ;;  %v476_v36 = vld [vmem:[%s929_s30 + $0x8] sm:$0xff]  ;;  %v477_v40 = vld [vmem:[%s929_s30 + $0x10] sm:$0xff]  ;;  %v470_v41 = vld [vmem:[%s923_s27 + $0x18] sm:$0xff] }
  0x32   : > { %462 = vst [vmem:[%s911_s24 + $0x18] sm:$0xff] %v454_v26  ;;  %v457_v38 = vadd.f32 %v449_v27, %v432_v23  ;;  %v485_v39 = vmul.f32 %v483_v18, %v476_v36  ;;  %v478_v42 = vld [vmem:[%s929_s30 + $0x18] sm:$0xff]  ;;  %v458_v43 = vadd.f32 %v450_v33, %v433_v25  ;;  %v486_v45 = vmul.f32 %v483_v18, %v477_v40  ;;  %v471_v47 = vld [vmem:[%s923_s27 + $0x20] sm:$0xff]  ;;  %v472_v49 = vld [vmem:[%s923_s27 + $0x28] sm:$0xff] }
  0x33   : > { %463 = vst [vmem:[%s911_s24 + $0x20] sm:$0xff] %v455_v31  ;;  %464 = vst [vmem:[%s911_s24 + $0x28] sm:$0xff] %v456_v32  ;;  %v492_v44 = vadd.f32 %v484_v34, %v467_v29  ;;  %v487_v46 = vmul.f32 %v483_v18, %v478_v42  ;;  %v479_v48 = vld [vmem:[%s929_s30 + $0x20] sm:$0xff]  ;;  %v480_v52 = vld [vmem:[%s929_s30 + $0x28] sm:$0xff] }
  0x34   : > { %465 = vst [vmem:[%s911_s24 + $0x30] sm:$0xff] %v457_v38  ;;  %v493_v50 = vadd.f32 %v485_v39, %v468_v35  ;;  %v488_v51 = vmul.f32 %v483_v18, %v479_v48  ;;  %v473_v53 = vld [vmem:[%s923_s27 + $0x30] sm:$0xff]  ;;  %466 = vst [vmem:[%s911_s24 + $0x38] sm:$0xff] %v458_v43  ;;  %v494_v55 = vadd.f32 %v486_v45, %v469_v37  ;;  %v474_v59 = vld [vmem:[%s923_s27 + $0x38] sm:$0xff] }
  0x35   : > { %v481_v54 = vld [vmem:[%s929_s30 + $0x30] sm:$0xff]  ;;  %500 = vst [vmem:[%s951_s0] sm:$0xff] %v492_v44  ;;  %v495_v56 = vadd.f32 %v487_v46, %v470_v41  ;;  %v489_v57 = vmul.f32 %v483_v18, %v480_v52  ;;  %v482_v60 = vld [vmem:[%s929_s30 + $0x38] sm:$0xff] }
  0x36   : > { %v490_v58 = vmul.f32 %v483_v18, %v481_v54  ;;  %501 = vst [vmem:[%s951_s0 + $0x8] sm:$0xff] %v493_v50  ;;  %v496_v61 = vadd.f32 %v488_v51, %v471_v47  ;;  %v491_v62 = vmul.f32 %v483_v18, %v482_v60  ;;  %502 = vst [vmem:[%s951_s0 + $0x10] sm:$0xff] %v494_v55 }
  0x37   : > { %503 = vst [vmem:[%s951_s0 + $0x18] sm:$0xff] %v495_v56  ;;  %v497_v63 = vadd.f32 %v489_v57, %v472_v49 }
  0x38   : > { %v498_v0 = vadd.f32 %v490_v58, %v473_v53  ;;  %504 = vst [vmem:[%s951_s0 + $0x20] sm:$0xff] %v496_v61  ;;  %v499_v1 = vadd.f32 %v491_v62, %v474_v59 }
  0x39   : > { %505 = vst [vmem:[%s951_s0 + $0x28] sm:$0xff] %v497_v63 }
  0x3a   : > { %506 = vst [vmem:[%s951_s0 + $0x30] sm:$0xff] %v498_v0  ;;  %507 = vst [vmem:[%s951_s0 + $0x38] sm:$0xff] %v499_v1 }
  0x3b PF: > { %s28_s11 = sadd.s32 1, %s822_s11   ;;  %s993_s1 = smov %s818_s10 }
  0x3c   : > { %p25_p1 = scmp.ge.s32.totalorder %s28_s11, 4   ;;  %s994_s10 = smov %s996_s12 }
  0x3e   :  { %27 = sbr.rel (!%p25_p1) target bundleno = 27 (0x1b), region = 87 }

</bundles_post_ra>
